<compile_context>
chip_gen: v5e
topology: v5e:2x2
jax: 0.10.0
libtpu: 0.0.40
codegen_flags: <defaults>
</compile_context>

<pallas_src>
import functools
from typing import NamedTuple

import jax
import jax.numpy as jnp
from jax.experimental import pallas as pl
from jax.experimental.pallas import tpu as pltpu


class ModelOutput(NamedTuple):
    logits: jax.Array  # (B, C)


def _round_up(x: int, m: int) -> int:
    return (x + m - 1) // m * m


def _reference_loss(logits, targets, has_prediction):
    """Pure-JAX reference; also the tiny-shape fallback path."""
    logp = jax.nn.log_softmax(logits.astype(jnp.float32), axis=-1)
    nll = -jnp.take_along_axis(logp, targets.astype(jnp.int32)[:, None], axis=-1)[:, 0]
    mask = has_prediction.astype(jnp.float32)
    return jnp.sum(nll * mask) / jnp.maximum(jnp.sum(mask), 1.0)


def _masked_ce_kernel(logits_ref, tgt_ref, mask_ref, loss_out_ref, cnt_out_ref, *, tb, batch):
    """One batch tile: emit (sum(mask*CE), sum(mask)) partials for this tile."""
    i = pl.program_id(0)

    # Widen in-register: logits stay bf16/f32 in HBM & VMEM, all math is f32.
    logits = logits_ref[...].astype(jnp.float32)            # (tb, C)
    tgt = tgt_ref[...]                                      # (tb, 1) int32
    mask = mask_ref[...].astype(jnp.float32)                # (tb, 1)

    # Ragged tail: the last tile may read past row B (garbage rows); exclude them by
    # row index so neither garbage masks nor garbage logits can contribute.
    row = i * tb + jax.lax.broadcasted_iota(jnp.int32, (tb, 1), 0)
    mask = jnp.where(row < batch, mask, 0.0)

    # Numerically stable log-sum-exp; the target gather is fused into the same pass
    # over `shifted` so the logits vregs are traversed only once.
    row_max = jnp.max(logits, axis=-1, keepdims=True)                       # (tb, 1)
    shifted = logits - row_max                                              # (tb, C)
    expsum = jnp.sum(jnp.exp(shifted), axis=-1, keepdims=True)              # (tb, 1)

    col = jax.lax.broadcasted_iota(jnp.int32, shifted.shape, 1)             # (tb, C)
    tgt_shifted = jnp.sum(jnp.where(col == tgt, shifted, 0.0),
                          axis=-1, keepdims=True)                           # (tb, 1)

    # NOTE: out-of-range / negative targets give tgt_shifted == 0; such rows must be
    # excluded by has_prediction == 0 (same contract as the original module).
    nll = jnp.log(expsum) - tgt_shifted                                     # (tb, 1)

    # Select, don't multiply: NaN/Inf in masked-out / garbage rows cannot poison the sum.
    nll = jnp.where(mask > 0.0, nll, 0.0)

    # Lane-dense (8,128) partial-sum slabs (unmasked vst); host reads element [0,0].
    loss_out_ref[...] = jnp.broadcast_to(jnp.sum(nll), loss_out_ref.shape)
    cnt_out_ref[...] = jnp.broadcast_to(jnp.sum(mask), cnt_out_ref.shape)


def masked_cross_entropy_loss(model_output: ModelOutput,
                              targets: jax.Array,
                              has_prediction: jax.Array,
                              step=None,
                              *,
                              block_b=None,
                              force_pallas=False) -> jax.Array:
    """Concrete loss_fn wrapped by LossWrapper; hot path runs in Pallas."""
    del step  # unused by this loss
    logits = model_output.logits                    # (B, C), native dtype (bf16 OK)
    B, C = logits.shape

    # Tiny problems are dominated by launch + fixed per-step overhead; XLA's fused
    # log_softmax wins there.  The Pallas path is for bandwidth-limited sizes.
    if not force_pallas and B * C < (1 << 16):
        return _reference_loss(logits, targets, has_prediction)

    itemsize = logits.dtype.itemsize
    # Sub-32-bit dtypes pack along sublanes: f32 -> 8 rows, bf16 -> 16, int8/fp8 -> 32.
    packing = max(8, 32 // max(1, itemsize))

    # Per-generation VMEM budget (v7x has only 64 MiB physical; v5e/v6e have 128 MiB).
    try:
        vmem_cap = pltpu.get_tpu_info().vmem_capacity_bytes
    except Exception:
        vmem_cap = 64 * 1024 * 1024
    vmem_limit = max(32 * 1024 * 1024, min(int(vmem_cap * 0.6), 100 * 1024 * 1024))

    if block_b is None:
        # Budget per row: 2x native-dtype input (double buffering) + ~3 full-tile f32
        # temporaries (widened logits / shifted / exp) -- the real VMEM consumer.
        bytes_per_row = 2 * C * itemsize + 3 * C * 4
        tb = (vmem_limit // 2) // bytes_per_row
        tb = max(packing, min(4096, (int(tb) // packing) * packing))
    else:
        tb = int(block_b)
    tb = min(tb, _round_up(B, packing))
    assert tb % packing == 0, "batch tile must be a dtype-packing multiple"

    num_tiles = (B + tb - 1) // tb
    tgt2d = targets.astype(jnp.int32).reshape(B, 1)
    mask2d = has_prediction.astype(jnp.float32).reshape(B, 1)

    # TODO(synk): for vocab-scale C, add a class-axis grid with online LSE (running
    # max / exp-sum / target-logit in scratch) so tiles stay a few MiB on v7x.

    kernel = functools.partial(_masked_ce_kernel, tb=tb, batch=B)
    loss_parts, cnt_parts = pl.pallas_call(
        kernel,
        out_shape=(jax.ShapeDtypeStruct((num_tiles, 8, 128), jnp.float32),
                   jax.ShapeDtypeStruct((num_tiles, 8, 128), jnp.float32)),
        grid=(num_tiles,),
        in_specs=[
            pl.BlockSpec((tb, C), lambda i: (i, 0)),   # logits: native dtype on the wire
            pl.BlockSpec((tb, 1), lambda i: (i, 0)),   # targets (per-tile slice)
            pl.BlockSpec((tb, 1), lambda i: (i, 0)),   # has_prediction mask
        ],
        out_specs=(pl.BlockSpec((1, 8, 128), lambda i: (i, 0, 0)),
                   pl.BlockSpec((1, 8, 128), lambda i: (i, 0, 0))),
        compiler_params=pltpu.CompilerParams(
            # Per-tile partials, no cross-step state => batch axis is parallel (both
            # v7x TensorCores stream; neutral on single-TC v5e/v6e).
            dimension_semantics=("parallel",),
            vmem_limit_bytes=vmem_limit,
        ),
        cost_estimate=pl.CostEstimate(
            flops=5 * B * C,
            transcendentals=B * C,
            bytes_accessed=B * C * itemsize + B * 8 + num_tiles * 2 * 8 * 128 * 4,
        ),
    )(logits, tgt2d, mask2d)

    loss_sum = jnp.sum(loss_parts[:, 0, 0])
    mask_sum = jnp.sum(cnt_parts[:, 0, 0])
    return loss_sum / jnp.maximum(mask_sum, 1.0)


class LossWrapper:
    """Wrapper for the loss function to handle the has_prediction mask."""

    def __init__(self, loss_fn):
        self.loss_fn = loss_fn

    def __call__(self, model_output, targets, has_prediction, step=None):
        return self.loss_fn(model_output, targets, has_prediction, step)


if __name__ == "__main__":
    # Small shapes; B=30 with block_b=16 gives a 2-step grid with a ragged tail, so the
    # in-kernel row-validity masking and the per-tile-partial reduction are exercised.
    B, C = 30, 128
    key = jax.random.PRNGKey(0)
    k1, k2, k3 = jax.random.split(key, 3)

    logits = jax.random.normal(k1, (B, C), dtype=jnp.float32).astype(jnp.bfloat16)
    targets = jax.random.randint(k2, (B,), 0, C, dtype=jnp.int32)
    has_prediction = (jax.random.uniform(k3, (B,)) > 0.3).astype(jnp.float32)

    loss_fn = functools.partial(masked_cross_entropy_loss, force_pallas=True, block_b=16)
    wrapper = LossWrapper(loss_fn)
    out = wrapper(ModelOutput(logits=logits), targets, has_prediction, step=0)
    out = jax.block_until_ready(out)

    ref = _reference_loss(logits, targets, has_prediction)
    assert jnp.allclose(out, ref, atol=1e-4, rtol=1e-4), (out, ref)
    print("KERNEL_OK")
</pallas_src>

<mosaic_0001>
module attributes {stable_mosaic.version = 11 : i64} {
  func.func @_masked_ce_kernel(%arg0: i32, %arg1: memref<16x128xbf16, #tpu.memory_space<vmem>>, %arg2: memref<16x1xi32, #tpu.memory_space<vmem>>, %arg3: memref<16x1xf32, #tpu.memory_space<vmem>>, %arg4: memref<1x8x128xf32, #tpu.memory_space<vmem>>, %arg5: memref<1x8x128xf32, #tpu.memory_space<vmem>>) attributes {dimension_semantics = [#tpu.dimension_semantics<parallel>], iteration_bounds = array<i64: 2>, scalar_prefetch = 0 : i64, scratch_operands = 0 : i64, tpu.core_type = #tpu.core_type<tc>, window_params = [{transform_indices = @transform_0, window_bounds = array<i64: 16, 128>}, {transform_indices = @transform_1, window_bounds = array<i64: 16, 1>}, {transform_indices = @transform_2, window_bounds = array<i64: 16, 1>}, {transform_indices = @transform_3, window_bounds = array<i64: 1, 8, 128>}, {transform_indices = @transform_4, window_bounds = array<i64: 1, 8, 128>}]} {
    %c0 = arith.constant 0 : index
    %c0_0 = arith.constant 0 : index
    %0 = vector.load %arg1[%c0, %c0_0] : memref<16x128xbf16, #tpu.memory_space<vmem>>, vector<16x128xbf16>
    %1 = arith.extf %0 : vector<16x128xbf16> to vector<16x128xf32>
    %c0_1 = arith.constant 0 : index
    %c0_2 = arith.constant 0 : index
    %2 = vector.load %arg2[%c0_1, %c0_2] : memref<16x1xi32, #tpu.memory_space<vmem>>, vector<16x1xi32>
    %c0_3 = arith.constant 0 : index
    %c0_4 = arith.constant 0 : index
    %3 = vector.load %arg3[%c0_3, %c0_4] : memref<16x1xf32, #tpu.memory_space<vmem>>, vector<16x1xf32>
    %c16_i32 = arith.constant 16 : i32
    %4 = arith.muli %arg0, %c16_i32 : i32
    %5 = tpu.iota {dimensions = array<i32: 0>} : vector<16x1xi32>
    %6 = vector.broadcast %4 : i32 to vector<16x1xi32>
    %7 = arith.addi %6, %5 : vector<16x1xi32>
    %c30_i32 = arith.constant 30 : i32
    %8 = vector.broadcast %c30_i32 : i32 to vector<16x1xi32>
    %9 = arith.cmpi slt, %7, %8 : vector<16x1xi32>
    %cst = arith.constant 0.000000e+00 : f32
    %10 = vector.broadcast %cst : f32 to vector<16x1xf32>
    %11 = arith.select %9, %3, %10 : vector<16x1xi1>, vector<16x1xf32>
    %cst_5 = arith.constant dense<0xFF800000> : vector<16xf32>
    %12 = vector.multi_reduction <maximumf>, %1, %cst_5 [1] : vector<16x128xf32> to vector<16xf32>
    %13 = vector.shape_cast %12 : vector<16xf32> to vector<16x1xf32>
    %14 = vector.broadcast %13 : vector<16x1xf32> to vector<16x128xf32>
    %15 = arith.subf %1, %14 : vector<16x128xf32>
    %16 = math.exp %15 : vector<16x128xf32>
    %cst_6 = arith.constant dense<0.000000e+00> : vector<16xf32>
    %17 = vector.multi_reduction <add>, %16, %cst_6 [1] : vector<16x128xf32> to vector<16xf32>
    %18 = vector.shape_cast %17 : vector<16xf32> to vector<16x1xf32>
    %19 = tpu.iota {dimensions = array<i32: 1>} : vector<16x128xi32>
    %20 = vector.broadcast %2 : vector<16x1xi32> to vector<16x128xi32>
    %21 = arith.cmpi eq, %19, %20 : vector<16x128xi32>
    %cst_7 = arith.constant 0.000000e+00 : f32
    %22 = vector.broadcast %cst_7 : f32 to vector<16x128xf32>
    %23 = arith.select %21, %15, %22 : vector<16x128xi1>, vector<16x128xf32>
    %cst_8 = arith.constant dense<0.000000e+00> : vector<16xf32>
    %24 = vector.multi_reduction <add>, %23, %cst_8 [1] : vector<16x128xf32> to vector<16xf32>
    %25 = vector.shape_cast %24 : vector<16xf32> to vector<16x1xf32>
    %26 = math.log %18 : vector<16x1xf32>
    %27 = arith.subf %26, %25 : vector<16x1xf32>
    %cst_9 = arith.constant 0.000000e+00 : f32
    %28 = vector.broadcast %cst_9 : f32 to vector<16x1xf32>
    %29 = arith.cmpf ogt, %11, %28 : vector<16x1xf32>
    %cst_10 = arith.constant 0.000000e+00 : f32
    %30 = vector.broadcast %cst_10 : f32 to vector<16x1xf32>
    %31 = arith.select %29, %27, %30 : vector<16x1xi1>, vector<16x1xf32>
    %32 = vector.shape_cast %31 : vector<16x1xf32> to vector<1x16x1xf32>
    %cst_11 = arith.constant dense<0.000000e+00> : vector<1xf32>
    %33 = vector.multi_reduction <add>, %32, %cst_11 [1, 2] : vector<1x16x1xf32> to vector<1xf32>
    %34 = vector.shape_cast %33 : vector<1xf32> to vector<1x1x1xf32>
    %35 = vector.extract %34[0, 0, 0] : f32 from vector<1x1x1xf32>
    %36 = vector.broadcast %35 : f32 to vector<1x8x128xf32>
    %c0_12 = arith.constant 0 : index
    %c0_13 = arith.constant 0 : index
    %c0_14 = arith.constant 0 : index
    %37 = vector.load %arg4[%c0_12, %c0_13, %c0_14] : memref<1x8x128xf32, #tpu.memory_space<vmem>>, vector<1x8x128xf32>
    tpu.vector_store %arg4[%c0_12, %c0_13, %c0_14], %36 {strides = array<i32>} : memref<1x8x128xf32, #tpu.memory_space<vmem>>, vector<1x8x128xf32>,
    %38 = vector.shape_cast %11 : vector<16x1xf32> to vector<1x16x1xf32>
    %cst_15 = arith.constant dense<0.000000e+00> : vector<1xf32>
    %39 = vector.multi_reduction <add>, %38, %cst_15 [1, 2] : vector<1x16x1xf32> to vector<1xf32>
    %40 = vector.shape_cast %39 : vector<1xf32> to vector<1x1x1xf32>
    %41 = vector.extract %40[0, 0, 0] : f32 from vector<1x1x1xf32>
    %42 = vector.broadcast %41 : f32 to vector<1x8x128xf32>
    %c0_16 = arith.constant 0 : index
    %c0_17 = arith.constant 0 : index
    %c0_18 = arith.constant 0 : index
    %43 = vector.load %arg5[%c0_16, %c0_17, %c0_18] : memref<1x8x128xf32, #tpu.memory_space<vmem>>, vector<1x8x128xf32>
    tpu.vector_store %arg5[%c0_16, %c0_17, %c0_18], %42 {strides = array<i32>} : memref<1x8x128xf32, #tpu.memory_space<vmem>>, vector<1x8x128xf32>,
    return
  }
  func.func @transform_0(%arg0: i32) -> (i32, i32) {
    %c0_i32 = arith.constant 0 : i32
    %c0_i32_0 = arith.constant 0 : i32
    return %arg0, %c0_i32 : i32, i32
  }
  func.func @transform_1(%arg0: i32) -> (i32, i32) {
    %c0_i32 = arith.constant 0 : i32
    %c0_i32_0 = arith.constant 0 : i32
    return %arg0, %c0_i32 : i32, i32
  }
  func.func @transform_2(%arg0: i32) -> (i32, i32) {
    %c0_i32 = arith.constant 0 : i32
    %c0_i32_0 = arith.constant 0 : i32
    return %arg0, %c0_i32 : i32, i32
  }
  func.func @transform_3(%arg0: i32) -> (i32, i32, i32) {
    %c0_i32 = arith.constant 0 : i32
    %c0_i32_0 = arith.constant 0 : i32
    %c0_i32_1 = arith.constant 0 : i32
    return %arg0, %c0_i32, %c0_i32_0 : i32, i32, i32
  }
  func.func @transform_4(%arg0: i32) -> (i32, i32, i32) {
    %c0_i32 = arith.constant 0 : i32
    %c0_i32_0 = arith.constant 0 : i32
    %c0_i32_1 = arith.constant 0 : i32
    return %arg0, %c0_i32, %c0_i32_0 : i32, i32, i32
  }
}

</mosaic_0001>

<bundles_post_ra>
// kernel: tpu_custom_call.1
= control target key start
LH: loop header
LB: loop body
LE: loop exit
PB: predicated region body
PF: predicated region fallthrough
CT: control target
= control target key end

     0   :  { %10 = vsyncpa [#allocation3], 0  ;;  %s824_s0 = inlined_call_operand.vmem [shape: bf16[30,128], index: 0, kind: input, shape index: {}]   ;;  %s825_s1 = inlined_call_operand.vmem [shape: s32[30,1], index: 1, kind: input, shape index: {}]   ;;  %s826_s2 = inlined_call_operand.vmem [shape: f32[30,1], index: 2, kind: input, shape index: {}]   ;;  %s827_s3 = inlined_call_operand.hbm [shape: f32[2,8,128], index: 3, kind: output, shape index: {0}]   ;;  %s828_s4 = inlined_call_operand.hbm [shape: f32[2,8,128], index: 4, kind: output, shape index: {1}]  }
   0x1   :  { %12 = vsyncpa [#allocation3 + $0x1], 0 }
   0x2   :  { %13 = vsyncpa [#allocation5], 0 }
   0x3   :  { %15 = vsyncpa [#allocation5 + $0x1], 0  ;;  %s696_s15 = smov 0   ;;  %s698_s16 = smov 0  }
   0x4   :  { %s700_s17 = smov 0   ;;  %s702_s18 = smov 0  }
   0x5 LB: > { %s717_s19 = sadd.s32 4294967295, %s668_s18   ;;  %s492_s20 = sadd.s32 4294967294, %s668_s18   ;;  %s668_s18 = sphi %s702_s18, %s834_s18   ;;  %s664_s17 = sphi %s700_s17, %s833_s17   ;;  %s660_s16 = sphi %s698_s16, %s832_s16   ;;  %s656_s15 = sphi %s696_s15, %s831_s15  }
   0x6   : > { %s721_s21 = sadd.s32 1, %s668_s18   ;;  %s106_s22 = sadd.s32 1, %s664_s17 }
   0x7   : > { %s103_s23 = ssub.s32 %s668_s18, %s721_s21  ;;  %p116_p0 = scmp.ne.s32.totalorder %s664_s17, %s660_s16 }
   0x8   : > { %p104_p1 = scmp.eq.s32.totalorder %s103_s23, 0  ;;  %p117_p2 = scmp.eq.s32.totalorder %s717_s19, 1 }
   0x9   : > { %p122_p3 = scmp.ne.s32.totalorder %s660_s16, %s656_s15  ;;  %p123_p4 = scmp.eq.s32.totalorder %s492_s20, 1 }
   0xa   : > { %s732_s24 = scalar_select %p104_p1, %s664_s17, %s106_s22  }
   0xb   : > { %p734_p5 = por %p117_p2, %p116_p0  ;;  %p738_p6 = por %p123_p4, %p122_p3 }
   0xc   : > { %p495_p7 = scmp.ge.s32.totalorder %s668_s18, 1  ;;  %p194_p8 = scmp.lt.s32.totalorder %s668_s18, 3 }
   0xe   : > { %p195_p9 = pnand %p495_p7, %p194_p8 }
   0xf   : > { %s498_s27 = sshll.u32 (!%p195_p9), %s717_s19, 1  ;;  %s504_s10 = sshll.u32 (!%p195_p9), %s717_s19, 4 }
  0x10   : > { %198 = sbr.rel (%p195_p9) target bundleno = 488 (0x1e8), region = 32  ;;  %p236_p10 = scmp.lt.s32.totalorder (!%p195_p9), %s498_s27, 3 }
  0x11   : > { %s768_s14 = sand.u32 (!%p195_p9), 1, %s660_s16   ;;  %s507_s22 = sshll.u32 (!%p195_p9), %s717_s19, 3 }
  0x12   : > { %s496_s20 = sshll.u32 (!%p195_p9), %s768_s14, 3  ;;  %s371_s7 = scalar_lea.hbm (!%p195_p9), %s828_s4, %s507_s22 }
  0x13   : > { %s227_s8 = scalar_lea.vmem (!%p195_p9), [#allocation2], %s496_s20  ;;  %s375_s11 = sshll.u32 (!%p195_p9), %s371_s7, 4  ;;  %s780_s11 = int_to_ptr.hbm [resolvable:$true] %s375_s11 }
  0x15   : > { %v670_v0 = vmov 0   ;;  %s836_s27 = smov (!%p236_p10, %s498_s27), 3  ;;  %v262_v6 = vlaneseq  ;;  %v265_v21 = vstv %s504_s10  ;;  %vm312_vm4 = vcmask 7168  }
  0x16   : > { %564 = vset.pattern.permute.xlu1 %v670_v0  ;;  %565 = vset.pattern.permute.xlu0 %v670_v0  ;;  %s499_s28 = sshll.u32 %s836_s27, 2  ;;  %s501_s29 = sshll.u32 %s836_s27, 3 }
  0x17   : > { %s239_s6 = scalar_lea.vmem %s824_s0, %s499_s28  ;;  %s245_s9 = scalar_lea.vmem %s825_s1, %s501_s29  ;;  %v287_v7 = vand.u32 127, %v262_v6  ;;  %v263_v20 = vshrl.u32 %v262_v6, 7 }
  0x18   : > { %v512_v1 = vld [vmem:[%s239_s6] sm:$0xff]   ;;  %v258_v4 = vld [vmem:[%s245_s9 + $0x8] sm:$0xff]  ;;  %s251_s13 = scalar_lea.vmem %s826_s2, %s501_s29  ;;  %s357_s28 = scalar_lea.hbm %s827_s3, %s507_s22 }
  0x19   : > { %v257_v2 = vld [vmem:[%s245_s9] sm:$0xff]  ;;  %v513_v3 = vunpack.c.l.bf16 %v512_v1  ;;  %v514_v5 = vunpack.c.h.bf16 %v512_v1  ;;  %v266_v22 = vadd.s32 %v265_v21, %v263_v20  ;;  %v264_v24 = vadd.s32 8, %v263_v20  ;;  %v260_v27 = vld [vmem:[%s251_s13 + $0x8] sm:$0xff]  ;;  %s234_s29 = scalar_lea.vmem [#allocation4], %s496_s20  ;;  %s359_s9 = sshll.u32 %s227_s8, 4  ;;  %s360_s9 = int_to_ptr.vmem [resolvable:$true] %s359_s9 }
  0x1a   : > { %289 = vperm.xlu1 %564, %v257_v2   ;;  %v259_v23 = vld [vmem:[%s251_s13] sm:$0xff]  ;;  %s373_s30 = sshll.u32 %s234_s29, 4  ;;  %s361_s10 = sshll.u32 %s357_s28, 4  ;;  %s778_s30 = int_to_ptr.vmem [resolvable:$true] %s373_s30  ;;  %s362_s10 = int_to_ptr.hbm [resolvable:$true] %s361_s10 }
  0x1b   : > { %272 = vmax.xlane.f32.xlu0 %v513_v3  ;;  %vm268_vm2 = vcmp.lt.s32.totalorder %v266_v22, 30  ;;  %v267_v26 = vadd.s32 %v265_v21, %v264_v24  ;;  %s342_s13 = scalar_lea.sflag [#allocation3], %s768_s14  ;;  %s588_s23 = sshra.s32 %s362_s10, 4  ;;  %s589_s23 = int_to_ptr.hbm [resolvable:$true] %s588_s23 }
  0x1c   : > { %v270_v25 = vsel %vm268_vm2, %v259_v23, 0.0  ;;  %s590_s20 = scalar_lea.hbm %s589_s23, 8  ;;  %s594_s28 = scalar_lea.hbm %s827_s3, 16 }
  0x1d   : > { %vm269_vm3 = vcmp.lt.s32.totalorder %v267_v26, 30  ;;  %v327_v29 = vsel %vm312_vm4, %v270_v25, 0.0  ;;  %vm308_vm5 = vcmp.gt.f32.partialorder %v270_v25, 0.0  ;;  %p591_p11 = scmp.ne.s32.totalorder %s589_s23, %s590_s20  ;;  %p595_p0 = scmp.lt.s32.totalorder %s589_s23, %s827_s3 }
  0x1e   : > { %v271_v28 = vsel %vm269_vm3, %v260_v27, 0.0  ;;  %p596_p1 = scmp.lt.s32.totalorder %s594_s28, %s590_s20 }
  0x1f   : > { %v328_v30 = vsel %vm312_vm4, %v271_v28, 0.0  ;;  %vm309_vm6 = vcmp.gt.f32.partialorder %v271_v28, 0.0  ;;  %p592_p12 = pnand %p591_p11, %p734_p5 }
  0x20   : > { %v329_v31 = vadd.f32 %v328_v30, %v327_v29  ;;  %p597_p2 = por %p596_p1, %p595_p0 }
  0x21   : > { %p593_p13 = pneg %p592_p12 }
  0x22   : > { %292 = vperm.xlu1 %564, %v258_v4  }
  0x23   : > { %274 = vmax.xlane.f32.xlu0 %v514_v5  ;;  %p598_p3 = pnand %p597_p2, %p593_p13 }
  0x8c   : > { %v290_v8 = vpop.permute.xlu1 %289 }
  0x8d   : > { %vm294_vm0 = vcmp.eq.s32.totalorder %v287_v7, %v290_v8 }
  0x8e   : > { %v273_v9 = vpop.xlane.xlu0 %272 }
  0x8f   : > { %v276_v10 = vsub.f32 %v513_v3, %v273_v9 }
  0x91   : > { %v296_v11 = vsel %vm294_vm0, %v276_v10, 0.0  ;;  %v278_v12 = vmul.f32 1.442695, %v276_v10 }
  0x92   : > { %298 = vadd.xlane.f32.xlu0 %v296_v11 }
  0x93   : > { %566 = vpow2.f32 %v278_v12 }
  0x94   : > { %v293_v13 = vpop.permute.xlu1 %292 }
  0x95   : > { %vm295_vm1 = vcmp.eq.s32.totalorder %v287_v7, %v293_v13 }
  0x96   : > { %v275_v14 = vpop.xlane.xlu0 %274 }
  0x97   : > { %v277_v15 = vsub.f32 %v514_v5, %v275_v14 }
  0x99   : > { %v567_v16 = vpop.eup %566  ;;  %v280_v17 = vmul.f32 1.442695, %v277_v15  ;;  %v297_v18 = vsel %vm295_vm1, %v277_v15, 0.0 }
  0x9a   : > { %282 = vadd.xlane.f32.xlu2 %v567_v16  ;;  %300 = vadd.xlane.f32.xlu1 %v297_v18 }
  0x9b   : > { %568 = vpow2.f32 %v280_v17  ;;  %330 = vadd.xlane.f32.xlu0 %v329_v31 }
  0xa1   : > { %v569_v19 = vpop.eup %568 }
  0xa2   : > { %284 = vadd.xlane.f32.xlu2 %v569_v19 }
 0x105   : > { %v299_v36 = vpop.xlane.xlu0 %298 }
 0x10d   : > { %v283_v32 = vpop.xlane.xlu2 %282  ;;  %v301_v40 = vpop.xlane.xlu1 %300 }
 0x10e   : > { %570 = vlog2.f32 %v283_v32  ;;  %v331_v47 = vpop.xlane.xlu0 %330 }
 0x10f   : > { %v332_v48 = vrot.slane %v331_v47, 4 }
 0x111   : > { %v333_v49 = vadd.f32 %v332_v48, %v331_v47 }
 0x113   : > { %v334_v50 = vrot.slane %v333_v49, 2 }
 0x114   : > { %v571_v33 = vpop.eup %570 }
 0x115   : > { %v285_v34 = vpop.xlane.xlu2 %284  ;;  %v303_v35 = vmul.f32 0.6931472, %v571_v33  ;;  %v335_v54 = vadd.f32 %v334_v50, %v333_v49 }
 0x116   : > { %572 = vlog2.f32 %v285_v34 }
 0x117   : > { %v306_v37 = vsub.f32 %v303_v35, %v299_v36  ;;  %v336_v57 = vrot.slane %v335_v54, 1 }
 0x119   : > { %v310_v42 = vsel %vm308_vm5, %v306_v37, 0.0  ;;  %v337_v60 = vadd.f32 %v336_v57, %v335_v54 }
 0x11a   : > { %v313_v44 = vsel %vm312_vm4, %v310_v42, 0.0 }
 0x11c   : > { %v573_v38 = vpop.eup %572 }
 0x11d   : > { %v305_v39 = vmul.f32 0.6931472, %v573_v38 }
 0x11f   : > { %v307_v41 = vsub.f32 %v305_v39, %v301_v40 }
 0x121   : > { %v311_v43 = vsel %vm309_vm6, %v307_v41, 0.0 }
 0x122   : > { %v314_v45 = vsel %vm312_vm4, %v311_v43, 0.0 }
 0x123   : > { %v315_v46 = vadd.f32 %v314_v45, %v313_v44 }
 0x125   : > { %316 = vadd.xlane.f32.xlu2 %v315_v46 }
 0x198   : > { %v317_v51 = vpop.xlane.xlu2 %316 }
 0x199   : > { %v318_v52 = vrot.slane %v317_v51, 4 }
 0x19b   : > { %v319_v53 = vadd.f32 %v318_v52, %v317_v51 }
 0x19d   : > { %v320_v55 = vrot.slane %v319_v53, 2 }
 0x19f   : > { %v321_v56 = vadd.f32 %v320_v55, %v319_v53 }
 0x1a1   : > { %v322_v58 = vrot.slane %v321_v56, 1 }
 0x1a3   : > { %v323_v59 = vadd.f32 %v322_v58, %v321_v56 }
 0x1a5   : > { %515 = vpush %v323_v59 }
 0x1a6   : > { %517 = vpush %v337_v60 }
 0x1d6   : > { %s516_s19 = spop %515 }
 0x1d7   : > { %v325_v61 = vstv %s516_s19  ;;  %s518_s12 = spop %517 }
 0x1d8   : > { %326 = vst [vmem:[%s227_s8] sm:$0xff] %v325_v61  ;;  %v339_v62 = vstv %s518_s12 }
 0x1d9   : > { %340 = vst [vmem:[%s234_s29] sm:$0xff] %v339_v62 }
 0x1da   : > { %601 = shalt.err (!%p598_p3)
}
 0x1db   : > { %519 = dma.vmem_to_hbm [thread:$0]  (%p734_p5), %s360_s9, 128, %s362_s10, %s342_s13  }
 0x1dc   : > { %s347_s29 = scalar_lea.sflag [#allocation5], %s768_s14  ;;  %s616_s7 = sshra.s32 %s780_s11, 4  ;;  %s617_s7 = int_to_ptr.hbm [resolvable:$true] %s616_s7 }
 0x1dd   : > { %s618_s8 = scalar_lea.hbm %s617_s7, 8  ;;  %s622_s23 = scalar_lea.hbm %s828_s4, 16 }
 0x1de   : > { %p619_p4 = scmp.ne.s32.totalorder %s617_s7, %s618_s8  ;;  %p623_p9 = scmp.lt.s32.totalorder %s617_s7, %s828_s4 }
 0x1df   : > { %p624_p10 = scmp.lt.s32.totalorder %s622_s23, %s618_s8 }
 0x1e0   : > { %p620_p7 = pnand %p619_p4, %p734_p5 }
 0x1e1   : > { %p625_p11 = por %p624_p10, %p623_p9 }
 0x1e2   : > { %p621_p8 = pneg %p620_p7 }
 0x1e4   : > { %p626_p12 = pnand %p625_p11, %p621_p8 }
 0x1e6   : > { %629 = shalt.err (!%p626_p12)
}
 0x1e7   : > { %520 = dma.vmem_to_hbm [thread:$0]  (%p734_p5), %s778_s30, 128, %s780_s11, %s347_s29  }
 0x1e8 PF: > { %p530_p13 = scmp.ge.s32.totalorder %s668_s18, 2  ;;  %s387_s14 = sand.u32 1, %s656_s15  }
 0x1e9   : > { %s388_s9 = scalar_lea.sflag [#allocation3], %s387_s14 }
 0x1ea   : > { %p524_p0 = pnand %p530_p13, %p738_p6 }
 0x1ec   : > { %p525_p1 = pneg %p524_p0 }
 0x1ee   : > { %647 = dma.done.wait (%p525_p1), %s388_s9, 128  }
 0x1ef   : > { %649 = vsyncadd (%p525_p1), %s388_s9, 4294967168  ;;  %s398_s10 = scalar_lea.sflag [#allocation5], %s387_s14 }
 0x1f0   : > { %651 = dma.done.wait (%p525_p1), %s398_s10, 128  }
 0x1f1   : > { %653 = vsyncadd (%p525_p1), %s398_s10, 4294967168  ;;  %p18_p5 = scmp.ge.s32.totalorder %s721_s21, 4   ;;  %s831_s15 = smov %s660_s16 }
 0x1f2   : > { %s832_s16 = smov %s664_s17  ;;  %s833_s17 = smov %s732_s24 }
 0x1f3   : > { %s834_s18 = smov %s721_s21  ;;  %20 = sbr.rel (!%p18_p5) target bundleno = 5 (0x5), region = 90 }
 0x1f8   :  { %404 = vsyncpa [#allocation3], 1 }
 0x1f9   :  { %406 = vsyncpa [#allocation3 + $0x1], 1 }
 0x1fa   :  { %407 = vsyncpa [#allocation5], 1 }
 0x1fb   :  { %409 = vsyncpa [#allocation5 + $0x1], 1 }

</bundles_post_ra>
